<compile_context>
chip_gen: v5e
topology: v5e:2x2
jax: 0.10.0
libtpu: 0.0.40
codegen_flags: <defaults>
</compile_context>

<pallas_src>
import jax
import jax.numpy as jnp
from jax.experimental import pallas as pl
from jax.experimental.pallas import tpu as pltpu


def _round_up(x, m):
    return ((x + m - 1) // m) * m


def _cdiv(a, b):
    return -(-a // b)


# ----------------------------------------------------------------------------
# Fused Pallas kernel:
#   relu(x @ W1s + t1) @ W2s + t2 + x     (W1s/W2s already BN-scale-folded)
# ----------------------------------------------------------------------------
def _bottleneck_kernel(x_ref, w1_ref, t1_ref, w2_ref, t2_ref, o_ref):
    x = x_ref[...]                                          # (TM, D_pad) f32
    # Matmul 1: bf16 MXU operands, f32 accumulation. BN1 scale is pre-folded
    # into the W1 columns, so only the shift + ReLU remain here.
    h = jnp.dot(x.astype(jnp.bfloat16), w1_ref[...],
                preferred_element_type=jnp.float32)         # (TM, E_pad)
    h = jnp.maximum(h + t1_ref[...], 0.0)
    # Matmul 2: bf16 operands, f32 accumulation (BN2 scale pre-folded).
    y = jnp.dot(h.astype(jnp.bfloat16), w2_ref[...],
                preferred_element_type=jnp.float32)         # (TM, D_pad)
    o_ref[...] = y + t2_ref[...] + x                        # shift2 + residual


# ----------------------------------------------------------------------------
# One-time parameter preprocessing (hoisted out of the per-call path).
# ----------------------------------------------------------------------------
def prepare_bottleneck_params(params, eps=1e-5):
    """Fold eval-mode BN into the linear weights/biases, transpose to
    (in, out), zero-pad channel dims to multiples of 128 (lane-dense MXU
    operands and output stores) and cast the weights to bf16.

    Returns (w1p, t1p, w2p, t2p). Padding columns are exactly zero so the
    ReLU / residual epilogue on padded lanes stays benign.
    """
    w1, b1 = params["lin1"]          # w1: (E, D), b1: (E,)   (PyTorch layout)
    g1, be1, m1, v1 = params["bn1"]  # each (E,)
    w2, b2 = params["lin2"]          # w2: (D, E), b2: (D,)
    g2, be2, m2, v2 = params["bn2"]  # each (D,)
    E, D = w1.shape

    f32, bf16 = jnp.float32, jnp.bfloat16
    scale1 = g1.astype(f32) / jnp.sqrt(v1.astype(f32) + eps)
    shift1 = (b1.astype(f32) - m1.astype(f32)) * scale1 + be1.astype(f32)
    scale2 = g2.astype(f32) / jnp.sqrt(v2.astype(f32) + eps)
    shift2 = (b2.astype(f32) - m2.astype(f32)) * scale2 + be2.astype(f32)

    D_pad, E_pad = _round_up(D, 128), _round_up(E, 128)

    # Fold BN scales into the weight output-columns, transpose to (in, out).
    w1f = (w1.astype(f32) * scale1[:, None]).T              # (D, E)
    w2f = (w2.astype(f32) * scale2[:, None]).T              # (E, D)

    w1p = jnp.zeros((D_pad, E_pad), bf16).at[:D, :E].set(w1f.astype(bf16))
    w2p = jnp.zeros((E_pad, D_pad), bf16).at[:E, :D].set(w2f.astype(bf16))
    t1p = jnp.zeros((1, E_pad), f32).at[0, :E].set(shift1)
    t2p = jnp.zeros((1, D_pad), f32).at[0, :D].set(shift2)
    return w1p, t1p, w2p, t2p


# ----------------------------------------------------------------------------
# Forward: one fused pallas_call over batch tiles.
# ----------------------------------------------------------------------------
def bottlenect1d_forward(x, w1p, t1p, w2p, t2p):
    """x: (B, D) -> (B, D). w1p/t1p/w2p/t2p from prepare_bottleneck_params."""
    B, D = x.shape
    D_pad, E_pad = w1p.shape
    assert D_pad == _round_up(D, 128)
    assert w2p.shape == (E_pad, D_pad)

    f32 = jnp.float32
    x = x.astype(f32)

    # Batch tiling: sublane-aligned; at least 2 grid steps whenever B > 8 so
    # the "parallel" axis spans both v7x TensorCores; cap TM at 512
    # (raise toward 1024 on v6e with its 128 MiB VMEM if desired).
    M8 = _round_up(max(B, 8), 8)
    if M8 <= 8:
        TM = M8
    else:
        TM = min(512, _round_up(_cdiv(M8, 2), 8))
    M_pad = _round_up(M8, TM)
    grid_m = M_pad // TM

    needs_pad = (M_pad, D_pad) != (B, D)
    if needs_pad:
        # General path: zero-pad rows/lanes. Padded columns stay exactly zero
        # through the whole kernel; padded rows are sliced off below.
        xp = jnp.zeros((M_pad, D_pad), f32).at[:B, :D].set(x)
    else:
        xp = x  # fast path: no padded-activation round trip through HBM.

    # Constant (weight-like) operands never change across the batch grid:
    # single-buffer them to reclaim VMEM when the grid actually pipelines.
    def _const_spec(shape):
        if grid_m > 1:
            return pl.BlockSpec(shape, lambda i: (0, 0),
                                pipeline_mode=pl.Buffered(1))
        return pl.BlockSpec(shape, lambda i: (0, 0))

    # Explicit VMEM budget: double-buffered x/out tiles, resident bf16
    # weights, shifts, in-kernel h temporaries, plus generous headroom.
    weight_bufs = 1 if grid_m > 1 else 2
    vmem_bytes = (
        4 * TM * D_pad * 4                              # x + out tiles, x2 buf
        + weight_bufs * 2 * D_pad * E_pad * 2           # bf16 W1 + W2
        + 4 * (E_pad + D_pad) * 4                       # shift vectors
        + TM * E_pad * 6 + TM * D_pad * 2               # h (f32 + bf16), x bf16
    )
    vmem_limit = min(int(vmem_bytes * 1.5) + (8 << 20), 100 << 20)

    out = pl.pallas_call(
        _bottleneck_kernel,
        out_shape=jax.ShapeDtypeStruct((M_pad, D_pad), f32),
        grid=(grid_m,),
        in_specs=[
            pl.BlockSpec((TM, D_pad), lambda i: (i, 0)),   # x (and residual)
            _const_spec((D_pad, E_pad)),                   # W1 (scale-folded)
            _const_spec((1, E_pad)),                       # shift1
            _const_spec((E_pad, D_pad)),                   # W2 (scale-folded)
            _const_spec((1, D_pad)),                       # shift2
        ],
        out_specs=pl.BlockSpec((TM, D_pad), lambda i: (i, 0)),
        compiler_params=pltpu.CompilerParams(
            dimension_semantics=("parallel",),
            vmem_limit_bytes=vmem_limit),
    )(xp, w1p, t1p, w2p, t2p)

    if needs_pad:
        out = out[:B, :D]
    return out


# ----------------------------------------------------------------------------
# Pure-JAX reference (eval-mode BN), deterministic synthetic parameters.
# ----------------------------------------------------------------------------
def _reference_forward(x, params, eps=1e-5):
    w1, b1 = params["lin1"]
    g1, be1, m1, v1 = params["bn1"]
    w2, b2 = params["lin2"]
    g2, be2, m2, v2 = params["bn2"]
    h = x @ w1.T + b1
    h = (h - m1) / jnp.sqrt(v1 + eps) * g1 + be1
    h = jnp.maximum(h, 0.0)
    y = h @ w2.T + b2
    y = (y - m2) / jnp.sqrt(v2 + eps) * g2 + be2
    return x + y


def init_params(key, input_dim, expand=5):
    E = expand * input_dim
    k = jax.random.split(key, 12)
    w1 = 0.05 * jax.random.normal(k[0], (E, input_dim), jnp.float32)
    b1 = 0.05 * jax.random.normal(k[1], (E,), jnp.float32)
    g1 = 1.0 + 0.1 * jax.random.normal(k[2], (E,), jnp.float32)
    be1 = 0.1 * jax.random.normal(k[3], (E,), jnp.float32)
    m1 = 0.1 * jax.random.normal(k[4], (E,), jnp.float32)
    v1 = 1.0 + 0.1 * jax.random.uniform(k[5], (E,), jnp.float32)
    w2 = 0.05 * jax.random.normal(k[6], (input_dim, E), jnp.float32)
    b2 = 0.05 * jax.random.normal(k[7], (input_dim,), jnp.float32)
    g2 = 1.0 + 0.1 * jax.random.normal(k[8], (input_dim,), jnp.float32)
    be2 = 0.1 * jax.random.normal(k[9], (input_dim,), jnp.float32)
    m2 = 0.1 * jax.random.normal(k[10], (input_dim,), jnp.float32)
    v2 = 1.0 + 0.1 * jax.random.uniform(k[11], (input_dim,), jnp.float32)
    return {
        "lin1": (w1, b1),
        "bn1": (g1, be1, m1, v1),
        "lin2": (w2, b2),
        "bn2": (g2, be2, m2, v2),
    }


# ----------------------------------------------------------------------------
if __name__ == "__main__":
    key = jax.random.PRNGKey(0)
    k_x, k_p = jax.random.split(key)

    B, D = 8, 32                      # batch=8, input_dim=32, expand=5 -> E=160
    x = jax.random.normal(k_x, (B, D), dtype=jnp.float32)
    params = init_params(k_p, D, expand=5)

    # One-time parameter preprocessing (hoisted out of the per-call path).
    w1p, t1p, w2p, t2p = prepare_bottleneck_params(params)

    fwd = jax.jit(bottlenect1d_forward)
    y = jax.block_until_ready(fwd(x, w1p, t1p, w2p, t2p))
    y_ref = _reference_forward(x, params)

    assert y.shape == (B, D), y.shape
    assert bool(jnp.all(jnp.isfinite(y)))
    # bf16 MXU operands with f32 accumulation -> slightly relaxed tolerance.
    max_err = float(jnp.max(jnp.abs(y - y_ref)))
    assert jnp.allclose(y, y_ref, rtol=2e-2, atol=2e-2), max_err
    print("KERNEL_OK")
</pallas_src>

<mosaic_0001>
module attributes {stable_mosaic.version = 11 : i64} {
  func.func @_bottleneck_kernel(%arg0: i32, %arg1: memref<8x128xf32, #tpu.memory_space<vmem>>, %arg2: memref<128x256xbf16, #tpu.memory_space<vmem>>, %arg3: memref<1x256xf32, #tpu.memory_space<vmem>>, %arg4: memref<256x128xbf16, #tpu.memory_space<vmem>>, %arg5: memref<1x128xf32, #tpu.memory_space<vmem>>, %arg6: memref<8x128xf32, #tpu.memory_space<vmem>>) attributes {dimension_semantics = [#tpu.dimension_semantics<parallel>], iteration_bounds = array<i64: 1>, scalar_prefetch = 0 : i64, scratch_operands = 0 : i64, tpu.core_type = #tpu.core_type<tc>, window_params = [{transform_indices = @transform_0, window_bounds = array<i64: 8, 128>}, {pipeline_mode = #tpu.pipeline_mode<synchronous>, transform_indices = @transform_1, window_bounds = array<i64: 128, 256>}, {pipeline_mode = #tpu.pipeline_mode<synchronous>, transform_indices = @transform_2, window_bounds = array<i64: 1, 256>}, {pipeline_mode = #tpu.pipeline_mode<synchronous>, transform_indices = @transform_3, window_bounds = array<i64: 256, 128>}, {pipeline_mode = #tpu.pipeline_mode<synchronous>, transform_indices = @transform_4, window_bounds = array<i64: 1, 128>}, {transform_indices = @transform_5, window_bounds = array<i64: 8, 128>}]} {
    %c0 = arith.constant 0 : index
    %c0_0 = arith.constant 0 : index
    %0 = vector.load %arg1[%c0, %c0_0] : memref<8x128xf32, #tpu.memory_space<vmem>>, vector<8x128xf32>
    %1 = arith.truncf %0 : vector<8x128xf32> to vector<8x128xbf16>
    %c0_1 = arith.constant 0 : index
    %c0_2 = arith.constant 0 : index
    %2 = vector.load %arg2[%c0_1, %c0_2] : memref<128x256xbf16, #tpu.memory_space<vmem>>, vector<128x256xbf16>
    %cst = arith.constant dense<0.000000e+00> : vector<8x256xf32>
    %3 = tpu.matmul %1, %2, %cst {dimension_numbers = #tpu.dot_dimension_numbers<[1], [0], [0], [1], [0, 0, 1, 1], [], []>} : vector<8x128xbf16>, vector<128x256xbf16>, vector<8x256xf32> -> vector<8x256xf32>
    %c0_3 = arith.constant 0 : index
    %c0_4 = arith.constant 0 : index
    %4 = vector.load %arg3[%c0_3, %c0_4] : memref<1x256xf32, #tpu.memory_space<vmem>>, vector<1x256xf32>
    %5 = vector.broadcast %4 : vector<1x256xf32> to vector<8x256xf32>
    %6 = arith.addf %3, %5 : vector<8x256xf32>
    %cst_5 = arith.constant 0.000000e+00 : f32
    %7 = vector.broadcast %cst_5 : f32 to vector<8x256xf32>
    %8 = arith.maximumf %6, %7 : vector<8x256xf32>
    %9 = arith.truncf %8 : vector<8x256xf32> to vector<8x256xbf16>
    %c0_6 = arith.constant 0 : index
    %c0_7 = arith.constant 0 : index
    %10 = vector.load %arg4[%c0_6, %c0_7] : memref<256x128xbf16, #tpu.memory_space<vmem>>, vector<256x128xbf16>
    %cst_8 = arith.constant dense<0.000000e+00> : vector<8x128xf32>
    %11 = tpu.matmul %9, %10, %cst_8 {dimension_numbers = #tpu.dot_dimension_numbers<[1], [0], [0], [1], [0, 0, 1, 1], [], []>} : vector<8x256xbf16>, vector<256x128xbf16>, vector<8x128xf32> -> vector<8x128xf32>
    %c0_9 = arith.constant 0 : index
    %c0_10 = arith.constant 0 : index
    %12 = vector.load %arg5[%c0_9, %c0_10] : memref<1x128xf32, #tpu.memory_space<vmem>>, vector<1x128xf32>
    %13 = vector.broadcast %12 : vector<1x128xf32> to vector<8x128xf32>
    %14 = arith.addf %11, %13 : vector<8x128xf32>
    %15 = arith.addf %14, %0 : vector<8x128xf32>
    %c0_11 = arith.constant 0 : index
    %c0_12 = arith.constant 0 : index
    %16 = vector.load %arg6[%c0_11, %c0_12] : memref<8x128xf32, #tpu.memory_space<vmem>>, vector<8x128xf32>
    tpu.vector_store %arg6[%c0_11, %c0_12], %15 {strides = array<i32>} : memref<8x128xf32, #tpu.memory_space<vmem>>, vector<8x128xf32>,
    return
  }
  func.func @transform_0(%arg0: i32) -> (i32, i32) {
    %c0_i32 = arith.constant 0 : i32
    %c0_i32_0 = arith.constant 0 : i32
    return %arg0, %c0_i32 : i32, i32
  }
  func.func @transform_1(%arg0: i32) -> (i32, i32) {
    %c0_i32 = arith.constant 0 : i32
    %c0_i32_0 = arith.constant 0 : i32
    %c0_i32_1 = arith.constant 0 : i32
    return %c0_i32, %c0_i32_0 : i32, i32
  }
  func.func @transform_2(%arg0: i32) -> (i32, i32) {
    %c0_i32 = arith.constant 0 : i32
    %c0_i32_0 = arith.constant 0 : i32
    %c0_i32_1 = arith.constant 0 : i32
    return %c0_i32, %c0_i32_0 : i32, i32
  }
  func.func @transform_3(%arg0: i32) -> (i32, i32) {
    %c0_i32 = arith.constant 0 : i32
    %c0_i32_0 = arith.constant 0 : i32
    %c0_i32_1 = arith.constant 0 : i32
    return %c0_i32, %c0_i32_0 : i32, i32
  }
  func.func @transform_4(%arg0: i32) -> (i32, i32) {
    %c0_i32 = arith.constant 0 : i32
    %c0_i32_0 = arith.constant 0 : i32
    %c0_i32_1 = arith.constant 0 : i32
    return %c0_i32, %c0_i32_0 : i32, i32
  }
  func.func @transform_5(%arg0: i32) -> (i32, i32) {
    %c0_i32 = arith.constant 0 : i32
    %c0_i32_0 = arith.constant 0 : i32
    return %arg0, %c0_i32 : i32, i32
  }
}

</mosaic_0001>

<bundles_post_ra>
// kernel: bottlenect1d_forward.1
= control target key start
LH: loop header
LB: loop body
LE: loop exit
PB: predicated region body
PF: predicated region fallthrough
CT: control target
= control target key end

     0   :  { %10 = vsyncpa [#allocation3], 0  ;;  %s666_s0 = inlined_call_operand.vmem [shape: f32[8,128], index: 0, kind: input, shape index: {}]   ;;  %s667_s1 = inlined_call_operand.hbm [shape: bf16[128,256], index: 1, kind: input, shape index: {}]   ;;  %s668_s2 = inlined_call_operand.vmem [shape: f32[1,256], index: 2, kind: input, shape index: {}]   ;;  %s669_s3 = inlined_call_operand.hbm [shape: bf16[256,128], index: 3, kind: input, shape index: {}]   ;;  %s670_s4 = inlined_call_operand.vmem [shape: f32[1,128], index: 4, kind: input, shape index: {}]   ;;  %s671_s5 = inlined_call_operand.hbm [shape: f32[8,128], index: 5, kind: output, shape index: {}]  }
   0x1   :  { %11 = vsyncpa [#allocation6], 0 }
   0x2   :  { %12 = vsyncpa [#allocation4], 0  ;;  %s19_s20 = sshll.u32 %s667_s1, 4  ;;  %s611_s21 = smov [#allocation2]   ;;  %s20_s20 = int_to_ptr.hbm [resolvable:$true] %s19_s20 }
   0x3   :  { %s21_s22 = sshll.u32 %s611_s21, 4  ;;  %s34_s25 = sshll.u32 %s669_s3, 4  ;;  %s22_s22 = int_to_ptr.vmem [resolvable:$true] %s21_s22  ;;  %s35_s25 = int_to_ptr.hbm [resolvable:$true] %s34_s25 }
   0x4   :  { %s612_s26 = smov 128   ;;  %s613_s27 = smov 8  }
   0x5   :  { %27 = dma.hbm_to_vmem [thread:$0]  %s20_s20, 2048, %s22_s22, [#allocation3], %s612_s26, %s612_s26, %s613_s27  }
   0x6   :  { %s614_s28 = smov [#allocation5]   ;;  %s615_s30 = smov 64  }
   0x7   :  { %s36_s29 = sshll.u32 %s614_s28, 4  ;;  %s616_s6 = smov 4   ;;  %s37_s29 = int_to_ptr.vmem [resolvable:$true] %s36_s29 }
   0x8   :  { %42 = dma.hbm_to_vmem [thread:$0]  %s35_s25, 2048, %s37_s29, [#allocation6], %s615_s30, %s615_s30, %s616_s6  }
   0x9   :  { %605 = dma.done.wait [#allocation3], 2048  }
   0xa   :  { %606 = vsyncadd [#allocation3], 4294965248 }
   0xb   :  { %607 = dma.done.wait [#allocation6], 2048  }
   0xc   :  { %608 = vsyncadd [#allocation6], 4294965248  ;;  %v423_v0 = vld [vmem:[#allocation2 + $0x70] sm:$0xf]  ;;  %v508_v1 = vld [vmem:[#allocation2 + $0x74] sm:$0xf0] }
   0xd   :  { %v507_v2 = vld [vmem:[#allocation2 + $0x74] sm:$0xf]  ;;  %v424_v3 = vor.u32 %v508_v1, %v423_v0  ;;  %v425_v4 = vld [vmem:[#allocation2 + $0x78] sm:$0xf0]  ;;  %v415_v5 = vld [vmem:[#allocation2 + $0x60] sm:$0xf] }
   0xe   :  { %v506_v6 = vld [vmem:[#allocation2 + $0x64] sm:$0xf0]  ;;  %v428_v7 = vor.u32 %v507_v2, %v425_v4  ;;  %v505_v8 = vld [vmem:[#allocation2 + $0x64] sm:$0xf]  ;;  %v417_v9 = vld [vmem:[#allocation2 + $0x68] sm:$0xf0] }
   0xf   :  { %157 = vmatpush.bf16.msra.mxu0 %v424_v3  ;;  %v416_v10 = vor.u32 %v506_v6, %v415_v5  ;;  %v420_v11 = vor.u32 %v505_v8, %v417_v9  ;;  %v407_v12 = vld [vmem:[#allocation2 + $0x50] sm:$0xf]  ;;  %v504_v13 = vld [vmem:[#allocation2 + $0x54] sm:$0xf0]  ;;  %v503_v14 = vld [vmem:[#allocation2 + $0x54] sm:$0xf] }
  0x10   :  { %170 = vmatpush.bf16.msra.mxu1 %v428_v7  ;;  %v409_v15 = vld [vmem:[#allocation2 + $0x58] sm:$0xf0]  ;;  %v408_v16 = vor.u32 %v504_v13, %v407_v12  ;;  %v399_v18 = vld [vmem:[#allocation2 + $0x40] sm:$0xf]  ;;  %v502_v19 = vld [vmem:[#allocation2 + $0x44] sm:$0xf0] }
  0x11   :  { %v412_v17 = vor.u32 %v503_v14, %v409_v15  ;;  %v501_v20 = vld [vmem:[#allocation2 + $0x44] sm:$0xf]  ;;  %v401_v21 = vld [vmem:[#allocation2 + $0x48] sm:$0xf0]  ;;  %v400_v22 = vor.u32 %v502_v19, %v399_v18  ;;  %v516_v23 = vld [vmem:[#allocation5 + $0x38] sm:$0xff]  ;;  %s354_s13 = sshll.u32 %s671_s5, 4  ;;  %s355_s13 = int_to_ptr.hbm [resolvable:$true] %s354_s13 }
  0x12   :  { %v524_v24 = vld [vmem:[#allocation5 + $0x78] sm:$0xff]  ;;  %v404_v25 = vor.u32 %v501_v20, %v401_v21  ;;  %v391_v26 = vld [vmem:[#allocation2 + $0x30] sm:$0xf]  ;;  %v499_v28 = vld [vmem:[#allocation2 + $0x34] sm:$0xf]  ;;  %319 = vmatpush.bf16.msra.mxu2 %v516_v23 }
  0x13   :  { %158 = vmatpush.bf16.msra.mxu0 %v416_v10  ;;  %v500_v27 = vld [vmem:[#allocation2 + $0x34] sm:$0xf0]  ;;  %v393_v29 = vld [vmem:[#allocation2 + $0x38] sm:$0xf0]  ;;  %332 = vmatpush.bf16.msra.mxu3 %v524_v24  ;;  %v515_v30 = vld [vmem:[#allocation5 + $0x30] sm:$0xff] }
  0x14   :  { %171 = vmatpush.bf16.msra.mxu1 %v420_v11  ;;  %v523_v31 = vld [vmem:[#allocation5 + $0x70] sm:$0xff]  ;;  %v392_v32 = vor.u32 %v500_v27, %v391_v26  ;;  %v396_v33 = vor.u32 %v499_v28, %v393_v29  ;;  %v383_v34 = vld [vmem:[#allocation2 + $0x20] sm:$0xf]  ;;  %v498_v35 = vld [vmem:[#allocation2 + $0x24] sm:$0xf0] }
  0x15   :  { %v497_v36 = vld [vmem:[#allocation2 + $0x24] sm:$0xf]  ;;  %v385_v37 = vld [vmem:[#allocation2 + $0x28] sm:$0xf0]  ;;  %v384_v40 = vor.u32 %v498_v35, %v383_v34  ;;  %v375_v42 = vld [vmem:[#allocation2 + $0x10] sm:$0xf] }
  0x16   :  { %320 = vmatpush.bf16.msra.mxu2 %v515_v30  ;;  %v514_v38 = vld [vmem:[#allocation5 + $0x28] sm:$0xff]  ;;  %v388_v41 = vor.u32 %v497_v36, %v385_v37  ;;  %v496_v43 = vld [vmem:[#allocation2 + $0x14] sm:$0xf0]  ;;  %v495_v44 = vld [vmem:[#allocation2 + $0x14] sm:$0xf] }
  0x17   :  { %159 = vmatpush.bf16.msra.mxu0 %v408_v16  ;;  %333 = vmatpush.bf16.msra.mxu3 %v523_v31  ;;  %v522_v39 = vld [vmem:[#allocation5 + $0x68] sm:$0xff]  ;;  %v377_v45 = vld [vmem:[#allocation2 + $0x18] sm:$0xf0]  ;;  %v513_v46 = vld [vmem:[#allocation5 + $0x20] sm:$0xff]  ;;  %v376_v48 = vor.u32 %v496_v43, %v375_v42 }
  0x18   :  { %172 = vmatpush.bf16.msra.mxu1 %v412_v17  ;;  %v521_v47 = vld [vmem:[#allocation5 + $0x60] sm:$0xff]  ;;  %v380_v49 = vor.u32 %v495_v44, %v377_v45  ;;  %v494_v51 = vld [vmem:[#allocation2 + $0x4] sm:$0xf0]  ;;  %v369_v53 = vld [vmem:[#allocation2 + $0x8] sm:$0xf0] }
  0x19   :  { %v367_v50 = vld [vmem:[#allocation2] sm:$0xf]  ;;  %v493_v52 = vld [vmem:[#allocation2 + $0x4] sm:$0xf]  ;;  %v512_v54 = vld [vmem:[#allocation5 + $0x18] sm:$0xff] }
  0x1a   :  { %321 = vmatpush.bf16.msra.mxu2 %v514_v38  ;;  %v520_v55 = vld [vmem:[#allocation5 + $0x58] sm:$0xff]  ;;  %v368_v56 = vor.u32 %v494_v51, %v367_v50  ;;  %v53_v57 = vld [vmem:[%s666_s0] sm:$0xff]  ;;  %v372_v58 = vor.u32 %v493_v52, %v369_v53  ;;  %v511_v59 = vld [vmem:[#allocation5 + $0x10] sm:$0xff] }
  0x1b   :  { %160 = vmatpush.bf16.msra.mxu0 %v400_v22  ;;  %334 = vmatpush.bf16.msra.mxu3 %v522_v39  ;;  %v519_v60 = vld [vmem:[#allocation5 + $0x50] sm:$0xff]  ;;  %v54_v61 = vpack.c.bf16 %v53_v57, %v53_v57  ;;  %v510_v62 = vld [vmem:[#allocation5 + $0x8] sm:$0xff]  ;;  %v509_v0 = vld [vmem:[#allocation5] sm:$0xff] }
  0x1c   :  { %173 = vmatpush.bf16.msra.mxu1 %v404_v25  ;;  %v518_v63 = vld [vmem:[#allocation5 + $0x48] sm:$0xff]  ;;  %v517_v1 = vld [vmem:[#allocation5 + $0x40] sm:$0xff] }
  0x1d   :  { %v71_v2 = vld [vmem:[%s668_s2] sm:$0x3]  ;;  %s617_s2 = smov [#allocation7]  }
  0x1e   :  { %322 = vmatpush.bf16.msra.mxu2 %v513_v46  ;;  %v73_v3 = vperm.slane %v71_v2, 0  ;;  %v74_v4 = vperm.slane %v71_v2, 1  ;;  %v532_v15 = vld [vmem:[%s670_s4] ss:$0 sm:$0xff]  ;;  %s352_s10 = sshll.u32 %s617_s2, 4  ;;  %s353_s10 = int_to_ptr.vmem [resolvable:$true] %s352_s10 }
  0x1f   :  { %161 = vmatpush.bf16.msra.mxu0 %v392_v32  ;;  %335 = vmatpush.bf16.msra.mxu3 %v521_v47 }
  0x20   :  { %174 = vmatpush.bf16.msra.mxu1 %v396_v33 }
  0x22   :  { %323 = vmatpush.bf16.msra.mxu2 %v512_v54 }
  0x23   :  { %162 = vmatpush.bf16.msra.mxu0 %v384_v40  ;;  %336 = vmatpush.bf16.msra.mxu3 %v520_v55 }
  0x24   :  { %175 = vmatpush.bf16.msra.mxu1 %v388_v41 }
  0x26   :  { %324 = vmatpush.bf16.msra.mxu2 %v511_v59 }
  0x27   :  { %163 = vmatpush.bf16.msra.mxu0 %v376_v48  ;;  %337 = vmatpush.bf16.msra.mxu3 %v519_v60 }
  0x28   :  { %176 = vmatpush.bf16.msra.mxu1 %v380_v49 }
  0x2a   :  { %325 = vmatpush.bf16.msra.mxu2 %v510_v62 }
  0x2b   :  { %164 = vmatpush.bf16.msra.mxu0 %v368_v56  ;;  %338 = vmatpush.bf16.msra.mxu3 %v518_v63 }
  0x2c   :  { %177 = vmatpush.bf16.msra.mxu1 %v372_v58 }
  0x2e   :  { %165 = vmatmul.bf16.vlgmr.msra.gmra.mxu0 %v54_v61  ;;  %326 = vmatpush.bf16.msra.mxu2 %v509_v0 }
  0x2f   :  { %178 = vmatmul.bf16.vlgmr.msra.gmra.mxu1 %v54_v61  ;;  %339 = vmatpush.bf16.msra.mxu3 %v517_v1 }
  0xab   :  { %v166_v5 = vpop.f32.mrf.mxu0 }
  0xac   :  { %v167_v6 = vadd.f32 %v166_v5, %v73_v3  ;;  %v179_v7 = vpop.f32.mrf.mxu1 }
  0xad   :  { %v180_v8 = vadd.f32 %v179_v7, %v74_v4 }
  0xae   :  { %v183_v9 = vmax.f32 %v167_v6, 0.0 }
  0xaf   :  { %v184_v10 = vmax.f32 %v180_v8, 0.0 }
  0xb0   :  { %v185_v11 = vpack.c.bf16 %v183_v9, %v183_v9 }
  0xb1   :  { %v186_v12 = vpack.c.bf16 %v184_v10, %v184_v10 }
  0xb2   :  { %327 = vmatmul.bf16.vlgmr.msra.gmra.mxu2 %v185_v11 }
  0xb3   :  { %340 = vmatmul.bf16.vlgmr.msra.gmra.mxu3 %v186_v12  ;;  %v168_v13 = vpop.f32.mrf.mxu0 }
  0xb4   :  { %v181_v14 = vpop.f32.mrf.mxu1 }
 0x135   :  { %v328_v16 = vpop.f32.mrf.mxu2 }
 0x136   :  { %v329_v17 = vadd.f32 %v532_v15, %v328_v16  ;;  %v341_v18 = vpop.f32.mrf.mxu3 }
 0x138   :  { %v342_v19 = vadd.f32 %v341_v18, %v329_v17 }
 0x13a   :  { %v345_v20 = vadd.f32 %v342_v19, %v53_v57 }
 0x13c   :  { %346 = vst [vmem:[#allocation7] sm:$0xff] %v345_v20 }
 0x13d   :  { %v330_v21 = vpop.f32.mrf.mxu2  ;;  %357 = dma.vmem_to_hbm [thread:$0]  %s353_s10, 128, %s355_s13, [#allocation4]  }
 0x13e   :  { %v343_v22 = vpop.f32.mrf.mxu3 }
 0x13f   :  { %609 = dma.done.wait [#allocation4], 128  }
 0x140   :  { %610 = vsyncadd [#allocation4], 4294967168 }
 0x141   :  { %362 = vsyncpa [#allocation3], 1 }
 0x142   :  { %363 = vsyncpa [#allocation6], 1 }
 0x143   :  { %364 = vsyncpa [#allocation4], 1 }

</bundles_post_ra>
